<compile_context>
chip_gen: v5e
topology: v5e:2x2
jax: 0.10.0
libtpu: 0.0.40
codegen_flags: <defaults>
</compile_context>

<pallas_src>
import numpy as np

import jax
import jax.numpy as jnp
from jax.experimental import pallas as pl
from jax.experimental.pallas import tpu as pltpu


# --------------------------------- kernel -----------------------------------
def make_mlp_ep_kernel(phases, clamped, has_nudge, f0, f_pad):
    """Build the fused-relaxation kernel.

    phases: static tuple of (n_steps, beta); each phase relaxes the state for
            n_steps Euler steps with that beta and writes its own output slab.

    Kernel ref order:
        s_slab, W_comb, dt_vec, [beta_target_slab, beta_col], out_slab per phase
    """

    def kernel(*refs):
        i = 0
        s_ref = refs[i]; i += 1
        wc_ref = refs[i]; i += 1
        dtv_ref = refs[i]; i += 1
        if has_nudge:
            btgt_ref = refs[i]; i += 1
            bcol_ref = refs[i]; i += 1
        out_refs = refs[i:]

        if not clamped:
            # (1, f_pad) mask selecting the s[0] columns -- only layer 0 is
            # clamped every step when clamped=False.
            col = jax.lax.broadcasted_iota(jnp.int32, (1, f_pad), 1)
            mask0 = col < f0

        def make_step(nudged, general):
            # general=True              : exact for arbitrary states
            # general=False, clamped    : all states known in [0,1] -> rho/rhop elided
            # general=False, !clamped   : identical to general
            def step(_, s):
                full = general or (not clamped)
                r = jnp.clip(s, 0.0, 1.0) if full else s                # rho
                # one fused MXU matmul: all layer drives + biases (ones row)
                pre = jnp.dot(r, wc_ref[...],
                              preferred_element_type=jnp.float32)
                if full:
                    gate = jnp.logical_and(s >= 0.0, s <= 1.0)          # rhop
                    d = gate.astype(jnp.float32) * pre - s
                else:
                    d = pre - s
                if nudged:
                    # + beta * (target - s[0]) (nonzero only on s[0] columns)
                    d = d + btgt_ref[...] - bcol_ref[...] * s
                # masked Euler update: dt on trainable columns, 0 on the
                # data / ones / padding columns (they stay exactly fixed).
                s_new = s + dtv_ref[...] * d
                if clamped:
                    s_new = jnp.clip(s_new, 0.0, 1.0)                   # all layers
                else:
                    s_new = jnp.where(mask0, jnp.clip(s_new, 0.0, 1.0), s_new)
                return s_new
            return step

        s_cur = s_ref[...]
        peeled = False
        for p, (n_steps, beta) in enumerate(phases):
            nudged = beta != 0.0
            rem = int(n_steps)
            if rem > 0 and clamped and not peeled:
                # Peel one fully-general step so arbitrary initial states are
                # handled exactly; afterwards every layer is clipped to [0,1].
                s_cur = make_step(nudged, True)(0, s_cur)
                rem -= 1
                peeled = True
            if rem > 0:
                # Full unroll only for short relaxations; bounded unroll keeps
                # code size / vreg live ranges sane for large T / Kmax.
                unroll = rem if rem <= 16 else 8
                s_cur = jax.lax.fori_loop(0, rem, make_step(nudged, False),
                                          s_cur, unroll=unroll)
            out_refs[p][...] = s_cur                 # lane-dense packed store

    return kernel


# --------------------------------- wrapper -----------------------------------
def _pick_batch_tile(batch, f_pad, n_batch_slabs):
    """Rows per grid step, from a VMEM budget; capped at 128 so (a) the
    loop-carried state stays a small fraction of the 64-vreg file and (b) any
    batch >= 256 yields >= 2 parallel grid steps (v7x megacore)."""
    if batch % 8 != 0:
        return batch                                   # single full-array block
    budget = 24 * 1024 * 1024                          # headroom under 32 MiB scoped VMEM
    per_row = 4 * f_pad * 2 * max(n_batch_slabs, 1)    # f32, double-buffered blocks
    cap = min(128, max(8, (budget // per_row) // 8 * 8))
    tile = min(batch, cap)
    while tile > 8 and batch % tile != 0:
        tile -= 8
    return tile if batch % tile == 0 else batch


def _mlp_ep_pallas(s, weights, biases, *, dt, phases, clamped, target=None):
    """Run a list of relaxation phases inside one pallas_call.

    s       : [s_0, ..., s_{n-1}, data]  each (batch, fcLayers[i]) f32
    weights : W[i].weight, shape (fcLayers[i], fcLayers[i+1])
    biases  : W[i].bias,   shape (fcLayers[i],)
    phases  : list of (n_steps, beta)
    Returns one relaxed state list per phase (each ends with the data layer).
    """
    n_state = len(s) - 1
    batch = int(s[0].shape[0])
    feats = [int(si.shape[1]) for si in s]             # includes data layer
    offs = [0]
    for fl in feats:
        offs.append(offs[-1] + fl)
    f_tr = offs[n_state]                                # total trainable features
    data_off = f_tr
    ones_col = offs[n_state + 1]
    f_used = ones_col + 1
    f_pad = max(128, ((f_used + 127) // 128) * 128)
    f0 = feats[0]

    betas = sorted({float(b) for (_, b) in phases if b != 0.0})
    assert len(betas) <= 1, "all nonzero-beta phases must share one beta"
    has_nudge = len(betas) > 0
    if has_nudge:
        assert target is not None, "beta != 0 requires a target"
        beta_val = betas[0]

    # ---- one-time host-side packing (layout plumbing, not per-step work) ----
    # Combined block weight matrix: rows follow the packed state layout,
    # columns hold the pre-activations of the trainable layers.
    Wc = np.zeros((f_pad, f_pad), np.float32)
    for l in range(n_state):
        c0, c1 = offs[l], offs[l] + feats[l]
        wl = np.asarray(weights[l], np.float32)                     # (f_l, f_{l+1})
        Wc[offs[l + 1]:offs[l + 1] + feats[l + 1], c0:c1] = wl.T    # W[l](rho(s[l+1]))
        if l >= 1:
            wm = np.asarray(weights[l - 1], np.float32)             # (f_{l-1}, f_l)
            Wc[offs[l - 1]:offs[l - 1] + feats[l - 1], c0:c1] = wm  # rho(s[l-1]) @ W[l-1]
        Wc[ones_col, c0:c1] = np.asarray(biases[l], np.float32)     # bias via ones row

    # Packed state slab: [trainable states | rho(data) | 1 | zero pad]
    S0 = np.zeros((batch, f_pad), np.float32)
    for l in range(n_state):
        S0[:, offs[l]:offs[l] + feats[l]] = np.asarray(s[l], np.float32)
    S0[:, data_off:data_off + feats[n_state]] = np.clip(
        np.asarray(s[-1], np.float32), 0.0, 1.0)                    # rho(x), invariant
    S0[:, ones_col] = 1.0

    # dt only on trainable columns -> data / ones / padding stay exactly fixed.
    dt_vec = np.zeros((1, f_pad), np.float32)
    dt_vec[0, :f_tr] = float(dt)

    inputs = [jnp.asarray(S0), jnp.asarray(Wc), jnp.asarray(dt_vec)]
    if has_nudge:
        btgt = np.zeros((batch, f_pad), np.float32)
        btgt[:, :f0] = beta_val * np.asarray(target, np.float32)
        bcol = np.zeros((1, f_pad), np.float32)
        bcol[0, :f0] = beta_val
        inputs += [jnp.asarray(btgt), jnp.asarray(bcol)]

    n_phases = len(phases)
    n_batch_slabs = 1 + (1 if has_nudge else 0) + n_phases
    bt = _pick_batch_tile(batch, f_pad, n_batch_slabs)
    grid = (batch // bt,)

    batch_spec = pl.BlockSpec((bt, f_pad), lambda b: (b, 0))
    wc_spec = pl.BlockSpec((f_pad, f_pad), lambda b: (0, 0))        # loop-invariant
    row_spec = pl.BlockSpec((1, f_pad), lambda b: (0, 0))           # loop-invariant

    in_specs = [batch_spec, wc_spec, row_spec]
    if has_nudge:
        in_specs += [batch_spec, row_spec]

    out_shapes = tuple(jax.ShapeDtypeStruct((batch, f_pad), jnp.float32)
                       for _ in range(n_phases))
    out_specs = tuple(batch_spec for _ in range(n_phases))

    kernel = make_mlp_ep_kernel(tuple((int(t), float(b)) for (t, b) in phases),
                                bool(clamped), has_nudge, f0, f_pad)

    outs = pl.pallas_call(
        kernel,
        grid=grid,
        out_shape=out_shapes,
        in_specs=in_specs,
        out_specs=out_specs,
        compiler_params=pltpu.CompilerParams(
            dimension_semantics=("parallel",),
            vmem_limit_bytes=32 * 1024 * 1024),
    )(*inputs)
    if not isinstance(outs, (list, tuple)):
        outs = (outs,)

    results = []
    for p in range(n_phases):
        slab = outs[p]
        layers = [slab[:, offs[l]:offs[l] + feats[l]] for l in range(n_state)]
        results.append(layers + [s[-1]])      # data layer returned unchanged
    return results


def mlp_ep_forward(s, weights, biases, *, dt, T, Kmax, clamped, beta=0.0,
                   target=None):
    """Equivalent of MlpEP.forward(s, beta, target) with tracking=False."""
    phases = [(T, 0.0)] if beta == 0.0 else [(Kmax, float(beta))]
    (out,) = _mlp_ep_pallas(s, weights, biases, dt=dt, phases=phases,
                            clamped=clamped, target=target)
    return out


def mlp_ep_free_and_nudged(s, weights, biases, *, dt, T, Kmax, clamped, beta,
                           target):
    """Fused free (T steps, beta=0) + nudged (Kmax steps, beta) relaxation in a
    single pallas_call.  Returns (s_free, s_nudged)."""
    phases = [(T, 0.0), (Kmax, float(beta))]
    s_free, s_nudged = _mlp_ep_pallas(s, weights, biases, dt=dt, phases=phases,
                                      clamped=clamped, target=target)
    return s_free, s_nudged


# --------------------------- pure numpy reference ----------------------------
def ref_forward(s, weights, biases, *, dt, n_steps, clamped,
                beta=0.0, target=None):
    s = [np.asarray(x, dtype=np.float32).copy() for x in s]
    W = [np.asarray(w, dtype=np.float32) for w in weights]
    B = [np.asarray(b, dtype=np.float32) for b in biases]
    tgt = None if target is None else np.asarray(target, dtype=np.float32)

    def rho(x):
        return np.clip(x, 0.0, 1.0)

    def rhop(x):
        return ((x >= 0.0) & (x <= 1.0)).astype(np.float32)

    n_state = len(s) - 1
    for _ in range(n_steps):
        dsdt = []
        d0 = -s[0] + rhop(s[0]) * (rho(s[1]) @ W[0].T + B[0])
        if beta != 0.0:
            d0 = d0 + beta * (tgt - s[0])
        dsdt.append(d0)
        for layer in range(1, n_state):
            pre = rho(s[layer + 1]) @ W[layer].T + B[layer] \
                  + rho(s[layer - 1]) @ W[layer - 1]
            dsdt.append(-s[layer] + rhop(s[layer]) * pre)
        for layer in range(n_state):
            s[layer] = s[layer] + dt * dsdt[layer]
            s[0] = np.clip(s[0], 0.0, 1.0)
            if clamped:
                s[layer] = np.clip(s[layer], 0.0, 1.0)
    return s


# ----------------------------------- main -------------------------------------
if __name__ == "__main__":
    # Hyperparameters implied by the module's `args`
    fcLayers = [16, 32, 64]       # [output, hidden, input] (PyTorch convention)
    batch = 8
    T, Kmax = 10, 5
    dt = 0.2
    clamped = True
    beta = 0.5

    key = jax.random.PRNGKey(0)
    keys = jax.random.split(key, 8)

    # nn.Linear-style init: W[i] = Linear(fcLayers[i+1], fcLayers[i])
    weights, biases = [], []
    for i in range(len(fcLayers) - 1):
        fan_in = fcLayers[i + 1]
        bound = 1.0 / np.sqrt(fan_in)
        w = jax.random.uniform(keys[2 * i], (fcLayers[i], fcLayers[i + 1]),
                               jnp.float32, -bound, bound)
        b = jax.random.uniform(keys[2 * i + 1], (fcLayers[i],),
                               jnp.float32, -bound, bound)
        weights.append(w)
        biases.append(b)

    # initHidden: zero states + clamped data layer
    data = jax.random.uniform(keys[6], (batch, fcLayers[-1]), jnp.float32)
    s = [jnp.zeros((batch, fcLayers[i]), jnp.float32)
         for i in range(len(fcLayers) - 1)] + [data]
    target = jax.random.uniform(keys[7], (batch, fcLayers[0]), jnp.float32)

    # ---- fused free (T steps) + nudged (Kmax steps) phase in ONE kernel ----
    s_free, s_nudge = mlp_ep_free_and_nudged(
        s, weights, biases, dt=dt, T=T, Kmax=Kmax, clamped=clamped,
        beta=beta, target=target)
    jax.block_until_ready(s_free[0])
    jax.block_until_ready(s_nudge[0])

    s_free_ref = ref_forward(s, weights, biases, dt=dt, n_steps=T,
                             clamped=clamped)
    s_nudge_ref = ref_forward(s_free_ref, weights, biases, dt=dt,
                              n_steps=Kmax, clamped=clamped,
                              beta=beta, target=target)

    for got, want in zip(s_free[:-1], s_free_ref[:-1]):
        np.testing.assert_allclose(np.asarray(got), want, rtol=1e-4, atol=1e-4)
    for got, want in zip(s_nudge[:-1], s_nudge_ref[:-1]):
        np.testing.assert_allclose(np.asarray(got), want, rtol=1e-4, atol=1e-4)

    # ---- single-phase API (matches MlpEP.forward), nudged call ----
    s_nudge2 = mlp_ep_forward(s_free, weights, biases, dt=dt, T=T, Kmax=Kmax,
                              clamped=clamped, beta=beta, target=target)
    jax.block_until_ready(s_nudge2[0])
    for got, want in zip(s_nudge2[:-1], s_nudge_ref[:-1]):
        np.testing.assert_allclose(np.asarray(got), want, rtol=1e-4, atol=1e-4)

    # ---- clamped=False path (exercises the rhop gate / s[0]-only clamping) ----
    s_free_nc = mlp_ep_forward(s, weights, biases, dt=dt, T=T, Kmax=Kmax,
                               clamped=False, beta=0.0)
    jax.block_until_ready(s_free_nc[0])
    s_free_nc_ref = ref_forward(s, weights, biases, dt=dt, n_steps=T,
                                clamped=False)
    for got, want in zip(s_free_nc[:-1], s_free_nc_ref[:-1]):
        np.testing.assert_allclose(np.asarray(got), want, rtol=1e-4, atol=1e-4)

    # TODO(synk): tracking=True (per-step host-side .item() logging) has no
    # in-kernel equivalent; computeGradientsEP/updateWeight are training-side
    # ops outside the forward pass and are not ported here.
    print("KERNEL_OK")
</pallas_src>

<mosaic_0001>
module attributes {stable_mosaic.version = 11 : i64} {
  func.func @kernel(%arg0: i32, %arg1: memref<8x128xf32, #tpu.memory_space<vmem>>, %arg2: memref<128x128xf32, #tpu.memory_space<vmem>>, %arg3: memref<1x128xf32, #tpu.memory_space<vmem>>, %arg4: memref<8x128xf32, #tpu.memory_space<vmem>>, %arg5: memref<1x128xf32, #tpu.memory_space<vmem>>, %arg6: memref<8x128xf32, #tpu.memory_space<vmem>>, %arg7: memref<8x128xf32, #tpu.memory_space<vmem>>) attributes {dimension_semantics = [#tpu.dimension_semantics<parallel>], iteration_bounds = array<i64: 1>, scalar_prefetch = 0 : i64, scratch_operands = 0 : i64, tpu.core_type = #tpu.core_type<tc>, window_params = [{transform_indices = @transform_0, window_bounds = array<i64: 8, 128>}, {pipeline_mode = #tpu.pipeline_mode<synchronous>, transform_indices = @transform_1, window_bounds = array<i64: 128, 128>}, {pipeline_mode = #tpu.pipeline_mode<synchronous>, transform_indices = @transform_2, window_bounds = array<i64: 1, 128>}, {transform_indices = @transform_3, window_bounds = array<i64: 8, 128>}, {pipeline_mode = #tpu.pipeline_mode<synchronous>, transform_indices = @transform_4, window_bounds = array<i64: 1, 128>}, {transform_indices = @transform_5, window_bounds = array<i64: 8, 128>}, {transform_indices = @transform_6, window_bounds = array<i64: 8, 128>}]} {
    %c0 = arith.constant 0 : index
    %c0_0 = arith.constant 0 : index
    %0 = vector.load %arg1[%c0, %c0_0] : memref<8x128xf32, #tpu.memory_space<vmem>>, vector<8x128xf32>
    %cst = arith.constant 0.000000e+00 : f32
    %cst_1 = arith.constant 1.000000e+00 : f32
    %1 = vector.broadcast %cst : f32 to vector<8x128xf32>
    %2 = arith.maximumf %1, %0 : vector<8x128xf32>
    %3 = vector.broadcast %cst_1 : f32 to vector<8x128xf32>
    %4 = arith.minimumf %3, %2 : vector<8x128xf32>
    %c0_2 = arith.constant 0 : index
    %c0_3 = arith.constant 0 : index
    %5 = vector.load %arg2[%c0_2, %c0_3] : memref<128x128xf32, #tpu.memory_space<vmem>>, vector<128x128xf32>
    %cst_4 = arith.constant dense<0.000000e+00> : vector<8x128xf32>
    %6 = tpu.matmul %4, %5, %cst_4 {dimension_numbers = #tpu.dot_dimension_numbers<[1], [0], [0], [1], [0, 0, 1, 1], [], []>} : vector<8x128xf32>, vector<128x128xf32>, vector<8x128xf32> -> vector<8x128xf32>
    %cst_5 = arith.constant 0.000000e+00 : f32
    %7 = vector.broadcast %cst_5 : f32 to vector<8x128xf32>
    %8 = arith.cmpf oge, %0, %7 : vector<8x128xf32>
    %cst_6 = arith.constant 1.000000e+00 : f32
    %9 = vector.broadcast %cst_6 : f32 to vector<8x128xf32>
    %10 = arith.cmpf ole, %0, %9 : vector<8x128xf32>
    %11 = arith.andi %8, %10 : vector<8x128xi1>
    %12 = arith.extui %11 : vector<8x128xi1> to vector<8x128xi32>
    %13 = arith.sitofp %12 : vector<8x128xi32> to vector<8x128xf32>
    %14 = arith.mulf %13, %6 : vector<8x128xf32>
    %15 = arith.subf %14, %0 : vector<8x128xf32>
    %c0_7 = arith.constant 0 : index
    %c0_8 = arith.constant 0 : index
    %16 = vector.load %arg3[%c0_7, %c0_8] : memref<1x128xf32, #tpu.memory_space<vmem>>, vector<1x128xf32>
    %17 = vector.broadcast %16 : vector<1x128xf32> to vector<8x128xf32>
    %18 = arith.mulf %17, %15 : vector<8x128xf32>
    %19 = arith.addf %0, %18 : vector<8x128xf32>
    %cst_9 = arith.constant 0.000000e+00 : f32
    %cst_10 = arith.constant 1.000000e+00 : f32
    %20 = vector.broadcast %cst_9 : f32 to vector<8x128xf32>
    %21 = arith.maximumf %20, %19 : vector<8x128xf32>
    %22 = vector.broadcast %cst_10 : f32 to vector<8x128xf32>
    %23 = arith.minimumf %22, %21 : vector<8x128xf32>
    %c0_i32 = arith.constant 0 : i32
    %c0_11 = arith.constant 0 : index
    %c0_12 = arith.constant 0 : index
    %24 = vector.load %arg2[%c0_11, %c0_12] : memref<128x128xf32, #tpu.memory_space<vmem>>, vector<128x128xf32>
    %cst_13 = arith.constant dense<0.000000e+00> : vector<8x128xf32>
    %25 = tpu.matmul %23, %24, %cst_13 {dimension_numbers = #tpu.dot_dimension_numbers<[1], [0], [0], [1], [0, 0, 1, 1], [], []>} : vector<8x128xf32>, vector<128x128xf32>, vector<8x128xf32> -> vector<8x128xf32>
    %26 = arith.subf %25, %23 : vector<8x128xf32>
    %c0_14 = arith.constant 0 : index
    %c0_15 = arith.constant 0 : index
    %27 = vector.load %arg3[%c0_14, %c0_15] : memref<1x128xf32, #tpu.memory_space<vmem>>, vector<1x128xf32>
    %28 = vector.broadcast %27 : vector<1x128xf32> to vector<8x128xf32>
    %29 = arith.mulf %28, %26 : vector<8x128xf32>
    %30 = arith.addf %23, %29 : vector<8x128xf32>
    %cst_16 = arith.constant 0.000000e+00 : f32
    %cst_17 = arith.constant 1.000000e+00 : f32
    %31 = vector.broadcast %cst_16 : f32 to vector<8x128xf32>
    %32 = arith.maximumf %31, %30 : vector<8x128xf32>
    %33 = vector.broadcast %cst_17 : f32 to vector<8x128xf32>
    %34 = arith.minimumf %33, %32 : vector<8x128xf32>
    %c1_i32 = arith.constant 1 : i32
    %c0_18 = arith.constant 0 : index
    %c0_19 = arith.constant 0 : index
    %35 = vector.load %arg2[%c0_18, %c0_19] : memref<128x128xf32, #tpu.memory_space<vmem>>, vector<128x128xf32>
    %cst_20 = arith.constant dense<0.000000e+00> : vector<8x128xf32>
    %36 = tpu.matmul %34, %35, %cst_20 {dimension_numbers = #tpu.dot_dimension_numbers<[1], [0], [0], [1], [0, 0, 1, 1], [], []>} : vector<8x128xf32>, vector<128x128xf32>, vector<8x128xf32> -> vector<8x128xf32>
    %37 = arith.subf %36, %34 : vector<8x128xf32>
    %c0_21 = arith.constant 0 : index
    %c0_22 = arith.constant 0 : index
    %38 = vector.load %arg3[%c0_21, %c0_22] : memref<1x128xf32, #tpu.memory_space<vmem>>, vector<1x128xf32>
    %39 = vector.broadcast %38 : vector<1x128xf32> to vector<8x128xf32>
    %40 = arith.mulf %39, %37 : vector<8x128xf32>
    %41 = arith.addf %34, %40 : vector<8x128xf32>
    %cst_23 = arith.constant 0.000000e+00 : f32
    %cst_24 = arith.constant 1.000000e+00 : f32
    %42 = vector.broadcast %cst_23 : f32 to vector<8x128xf32>
    %43 = arith.maximumf %42, %41 : vector<8x128xf32>
    %44 = vector.broadcast %cst_24 : f32 to vector<8x128xf32>
    %45 = arith.minimumf %44, %43 : vector<8x128xf32>
    %c2_i32 = arith.constant 2 : i32
    %c0_25 = arith.constant 0 : index
    %c0_26 = arith.constant 0 : index
    %46 = vector.load %arg2[%c0_25, %c0_26] : memref<128x128xf32, #tpu.memory_space<vmem>>, vector<128x128xf32>
    %cst_27 = arith.constant dense<0.000000e+00> : vector<8x128xf32>
    %47 = tpu.matmul %45, %46, %cst_27 {dimension_numbers = #tpu.dot_dimension_numbers<[1], [0], [0], [1], [0, 0, 1, 1], [], []>} : vector<8x128xf32>, vector<128x128xf32>, vector<8x128xf32> -> vector<8x128xf32>
    %48 = arith.subf %47, %45 : vector<8x128xf32>
    %c0_28 = arith.constant 0 : index
    %c0_29 = arith.constant 0 : index
    %49 = vector.load %arg3[%c0_28, %c0_29] : memref<1x128xf32, #tpu.memory_space<vmem>>, vector<1x128xf32>
    %50 = vector.broadcast %49 : vector<1x128xf32> to vector<8x128xf32>
    %51 = arith.mulf %50, %48 : vector<8x128xf32>
    %52 = arith.addf %45, %51 : vector<8x128xf32>
    %cst_30 = arith.constant 0.000000e+00 : f32
    %cst_31 = arith.constant 1.000000e+00 : f32
    %53 = vector.broadcast %cst_30 : f32 to vector<8x128xf32>
    %54 = arith.maximumf %53, %52 : vector<8x128xf32>
    %55 = vector.broadcast %cst_31 : f32 to vector<8x128xf32>
    %56 = arith.minimumf %55, %54 : vector<8x128xf32>
    %c3_i32 = arith.constant 3 : i32
    %c0_32 = arith.constant 0 : index
    %c0_33 = arith.constant 0 : index
    %57 = vector.load %arg2[%c0_32, %c0_33] : memref<128x128xf32, #tpu.memory_space<vmem>>, vector<128x128xf32>
    %cst_34 = arith.constant dense<0.000000e+00> : vector<8x128xf32>
    %58 = tpu.matmul %56, %57, %cst_34 {dimension_numbers = #tpu.dot_dimension_numbers<[1], [0], [0], [1], [0, 0, 1, 1], [], []>} : vector<8x128xf32>, vector<128x128xf32>, vector<8x128xf32> -> vector<8x128xf32>
    %59 = arith.subf %58, %56 : vector<8x128xf32>
    %c0_35 = arith.constant 0 : index
    %c0_36 = arith.constant 0 : index
    %60 = vector.load %arg3[%c0_35, %c0_36] : memref<1x128xf32, #tpu.memory_space<vmem>>, vector<1x128xf32>
    %61 = vector.broadcast %60 : vector<1x128xf32> to vector<8x128xf32>
    %62 = arith.mulf %61, %59 : vector<8x128xf32>
    %63 = arith.addf %56, %62 : vector<8x128xf32>
    %cst_37 = arith.constant 0.000000e+00 : f32
    %cst_38 = arith.constant 1.000000e+00 : f32
    %64 = vector.broadcast %cst_37 : f32 to vector<8x128xf32>
    %65 = arith.maximumf %64, %63 : vector<8x128xf32>
    %66 = vector.broadcast %cst_38 : f32 to vector<8x128xf32>
    %67 = arith.minimumf %66, %65 : vector<8x128xf32>
    %c4_i32 = arith.constant 4 : i32
    %c0_39 = arith.constant 0 : index
    %c0_40 = arith.constant 0 : index
    %68 = vector.load %arg2[%c0_39, %c0_40] : memref<128x128xf32, #tpu.memory_space<vmem>>, vector<128x128xf32>
    %cst_41 = arith.constant dense<0.000000e+00> : vector<8x128xf32>
    %69 = tpu.matmul %67, %68, %cst_41 {dimension_numbers = #tpu.dot_dimension_numbers<[1], [0], [0], [1], [0, 0, 1, 1], [], []>} : vector<8x128xf32>, vector<128x128xf32>, vector<8x128xf32> -> vector<8x128xf32>
    %70 = arith.subf %69, %67 : vector<8x128xf32>
    %c0_42 = arith.constant 0 : index
    %c0_43 = arith.constant 0 : index
    %71 = vector.load %arg3[%c0_42, %c0_43] : memref<1x128xf32, #tpu.memory_space<vmem>>, vector<1x128xf32>
    %72 = vector.broadcast %71 : vector<1x128xf32> to vector<8x128xf32>
    %73 = arith.mulf %72, %70 : vector<8x128xf32>
    %74 = arith.addf %67, %73 : vector<8x128xf32>
    %cst_44 = arith.constant 0.000000e+00 : f32
    %cst_45 = arith.constant 1.000000e+00 : f32
    %75 = vector.broadcast %cst_44 : f32 to vector<8x128xf32>
    %76 = arith.maximumf %75, %74 : vector<8x128xf32>
    %77 = vector.broadcast %cst_45 : f32 to vector<8x128xf32>
    %78 = arith.minimumf %77, %76 : vector<8x128xf32>
    %c5_i32 = arith.constant 5 : i32
    %c0_46 = arith.constant 0 : index
    %c0_47 = arith.constant 0 : index
    %79 = vector.load %arg2[%c0_46, %c0_47] : memref<128x128xf32, #tpu.memory_space<vmem>>, vector<128x128xf32>
    %cst_48 = arith.constant dense<0.000000e+00> : vector<8x128xf32>
    %80 = tpu.matmul %78, %79, %cst_48 {dimension_numbers = #tpu.dot_dimension_numbers<[1], [0], [0], [1], [0, 0, 1, 1], [], []>} : vector<8x128xf32>, vector<128x128xf32>, vector<8x128xf32> -> vector<8x128xf32>
    %81 = arith.subf %80, %78 : vector<8x128xf32>
    %c0_49 = arith.constant 0 : index
    %c0_50 = arith.constant 0 : index
    %82 = vector.load %arg3[%c0_49, %c0_50] : memref<1x128xf32, #tpu.memory_space<vmem>>, vector<1x128xf32>
    %83 = vector.broadcast %82 : vector<1x128xf32> to vector<8x128xf32>
    %84 = arith.mulf %83, %81 : vector<8x128xf32>
    %85 = arith.addf %78, %84 : vector<8x128xf32>
    %cst_51 = arith.constant 0.000000e+00 : f32
    %cst_52 = arith.constant 1.000000e+00 : f32
    %86 = vector.broadcast %cst_51 : f32 to vector<8x128xf32>
    %87 = arith.maximumf %86, %85 : vector<8x128xf32>
    %88 = vector.broadcast %cst_52 : f32 to vector<8x128xf32>
    %89 = arith.minimumf %88, %87 : vector<8x128xf32>
    %c6_i32 = arith.constant 6 : i32
    %c0_53 = arith.constant 0 : index
    %c0_54 = arith.constant 0 : index
    %90 = vector.load %arg2[%c0_53, %c0_54] : memref<128x128xf32, #tpu.memory_space<vmem>>, vector<128x128xf32>
    %cst_55 = arith.constant dense<0.000000e+00> : vector<8x128xf32>
    %91 = tpu.matmul %89, %90, %cst_55 {dimension_numbers = #tpu.dot_dimension_numbers<[1], [0], [0], [1], [0, 0, 1, 1], [], []>} : vector<8x128xf32>, vector<128x128xf32>, vector<8x128xf32> -> vector<8x128xf32>
    %92 = arith.subf %91, %89 : vector<8x128xf32>
    %c0_56 = arith.constant 0 : index
    %c0_57 = arith.constant 0 : index
    %93 = vector.load %arg3[%c0_56, %c0_57] : memref<1x128xf32, #tpu.memory_space<vmem>>, vector<1x128xf32>
    %94 = vector.broadcast %93 : vector<1x128xf32> to vector<8x128xf32>
    %95 = arith.mulf %94, %92 : vector<8x128xf32>
    %96 = arith.addf %89, %95 : vector<8x128xf32>
    %cst_58 = arith.constant 0.000000e+00 : f32
    %cst_59 = arith.constant 1.000000e+00 : f32
    %97 = vector.broadcast %cst_58 : f32 to vector<8x128xf32>
    %98 = arith.maximumf %97, %96 : vector<8x128xf32>
    %99 = vector.broadcast %cst_59 : f32 to vector<8x128xf32>
    %100 = arith.minimumf %99, %98 : vector<8x128xf32>
    %c7_i32 = arith.constant 7 : i32
    %c0_60 = arith.constant 0 : index
    %c0_61 = arith.constant 0 : index
    %101 = vector.load %arg2[%c0_60, %c0_61] : memref<128x128xf32, #tpu.memory_space<vmem>>, vector<128x128xf32>
    %cst_62 = arith.constant dense<0.000000e+00> : vector<8x128xf32>
    %102 = tpu.matmul %100, %101, %cst_62 {dimension_numbers = #tpu.dot_dimension_numbers<[1], [0], [0], [1], [0, 0, 1, 1], [], []>} : vector<8x128xf32>, vector<128x128xf32>, vector<8x128xf32> -> vector<8x128xf32>
    %103 = arith.subf %102, %100 : vector<8x128xf32>
    %c0_63 = arith.constant 0 : index
    %c0_64 = arith.constant 0 : index
    %104 = vector.load %arg3[%c0_63, %c0_64] : memref<1x128xf32, #tpu.memory_space<vmem>>, vector<1x128xf32>
    %105 = vector.broadcast %104 : vector<1x128xf32> to vector<8x128xf32>
    %106 = arith.mulf %105, %103 : vector<8x128xf32>
    %107 = arith.addf %100, %106 : vector<8x128xf32>
    %cst_65 = arith.constant 0.000000e+00 : f32
    %cst_66 = arith.constant 1.000000e+00 : f32
    %108 = vector.broadcast %cst_65 : f32 to vector<8x128xf32>
    %109 = arith.maximumf %108, %107 : vector<8x128xf32>
    %110 = vector.broadcast %cst_66 : f32 to vector<8x128xf32>
    %111 = arith.minimumf %110, %109 : vector<8x128xf32>
    %c8_i32 = arith.constant 8 : i32
    %c0_67 = arith.constant 0 : index
    %c0_68 = arith.constant 0 : index
    %112 = vector.load %arg2[%c0_67, %c0_68] : memref<128x128xf32, #tpu.memory_space<vmem>>, vector<128x128xf32>
    %cst_69 = arith.constant dense<0.000000e+00> : vector<8x128xf32>
    %113 = tpu.matmul %111, %112, %cst_69 {dimension_numbers = #tpu.dot_dimension_numbers<[1], [0], [0], [1], [0, 0, 1, 1], [], []>} : vector<8x128xf32>, vector<128x128xf32>, vector<8x128xf32> -> vector<8x128xf32>
    %114 = arith.subf %113, %111 : vector<8x128xf32>
    %c0_70 = arith.constant 0 : index
    %c0_71 = arith.constant 0 : index
    %115 = vector.load %arg3[%c0_70, %c0_71] : memref<1x128xf32, #tpu.memory_space<vmem>>, vector<1x128xf32>
    %116 = vector.broadcast %115 : vector<1x128xf32> to vector<8x128xf32>
    %117 = arith.mulf %116, %114 : vector<8x128xf32>
    %118 = arith.addf %111, %117 : vector<8x128xf32>
    %cst_72 = arith.constant 0.000000e+00 : f32
    %cst_73 = arith.constant 1.000000e+00 : f32
    %119 = vector.broadcast %cst_72 : f32 to vector<8x128xf32>
    %120 = arith.maximumf %119, %118 : vector<8x128xf32>
    %121 = vector.broadcast %cst_73 : f32 to vector<8x128xf32>
    %122 = arith.minimumf %121, %120 : vector<8x128xf32>
    %c0_74 = arith.constant 0 : index
    %c0_75 = arith.constant 0 : index
    %123 = vector.load %arg6[%c0_74, %c0_75] : memref<8x128xf32, #tpu.memory_space<vmem>>, vector<8x128xf32>
    tpu.vector_store %arg6[%c0_74, %c0_75], %122 {strides = array<i32>} : memref<8x128xf32, #tpu.memory_space<vmem>>, vector<8x128xf32>,
    %c0_i32_76 = arith.constant 0 : i32
    %c0_77 = arith.constant 0 : index
    %c0_78 = arith.constant 0 : index
    %124 = vector.load %arg2[%c0_77, %c0_78] : memref<128x128xf32, #tpu.memory_space<vmem>>, vector<128x128xf32>
    %cst_79 = arith.constant dense<0.000000e+00> : vector<8x128xf32>
    %125 = tpu.matmul %122, %124, %cst_79 {dimension_numbers = #tpu.dot_dimension_numbers<[1], [0], [0], [1], [0, 0, 1, 1], [], []>} : vector<8x128xf32>, vector<128x128xf32>, vector<8x128xf32> -> vector<8x128xf32>
    %126 = arith.subf %125, %122 : vector<8x128xf32>
    %c0_80 = arith.constant 0 : index
    %c0_81 = arith.constant 0 : index
    %127 = vector.load %arg4[%c0_80, %c0_81] : memref<8x128xf32, #tpu.memory_space<vmem>>, vector<8x128xf32>
    %128 = arith.addf %126, %127 : vector<8x128xf32>
    %c0_82 = arith.constant 0 : index
    %c0_83 = arith.constant 0 : index
    %129 = vector.load %arg5[%c0_82, %c0_83] : memref<1x128xf32, #tpu.memory_space<vmem>>, vector<1x128xf32>
    %130 = vector.broadcast %129 : vector<1x128xf32> to vector<8x128xf32>
    %131 = arith.mulf %130, %122 : vector<8x128xf32>
    %132 = arith.subf %128, %131 : vector<8x128xf32>
    %c0_84 = arith.constant 0 : index
    %c0_85 = arith.constant 0 : index
    %133 = vector.load %arg3[%c0_84, %c0_85] : memref<1x128xf32, #tpu.memory_space<vmem>>, vector<1x128xf32>
    %134 = vector.broadcast %133 : vector<1x128xf32> to vector<8x128xf32>
    %135 = arith.mulf %134, %132 : vector<8x128xf32>
    %136 = arith.addf %122, %135 : vector<8x128xf32>
    %cst_86 = arith.constant 0.000000e+00 : f32
    %cst_87 = arith.constant 1.000000e+00 : f32
    %137 = vector.broadcast %cst_86 : f32 to vector<8x128xf32>
    %138 = arith.maximumf %137, %136 : vector<8x128xf32>
    %139 = vector.broadcast %cst_87 : f32 to vector<8x128xf32>
    %140 = arith.minimumf %139, %138 : vector<8x128xf32>
    %c1_i32_88 = arith.constant 1 : i32
    %c0_89 = arith.constant 0 : index
    %c0_90 = arith.constant 0 : index
    %141 = vector.load %arg2[%c0_89, %c0_90] : memref<128x128xf32, #tpu.memory_space<vmem>>, vector<128x128xf32>
    %cst_91 = arith.constant dense<0.000000e+00> : vector<8x128xf32>
    %142 = tpu.matmul %140, %141, %cst_91 {dimension_numbers = #tpu.dot_dimension_numbers<[1], [0], [0], [1], [0, 0, 1, 1], [], []>} : vector<8x128xf32>, vector<128x128xf32>, vector<8x128xf32> -> vector<8x128xf32>
    %143 = arith.subf %142, %140 : vector<8x128xf32>
    %c0_92 = arith.constant 0 : index
    %c0_93 = arith.constant 0 : index
    %144 = vector.load %arg4[%c0_92, %c0_93] : memref<8x128xf32, #tpu.memory_space<vmem>>, vector<8x128xf32>
    %145 = arith.addf %143, %144 : vector<8x128xf32>
    %c0_94 = arith.constant 0 : index
    %c0_95 = arith.constant 0 : index
    %146 = vector.load %arg5[%c0_94, %c0_95] : memref<1x128xf32, #tpu.memory_space<vmem>>, vector<1x128xf32>
    %147 = vector.broadcast %146 : vector<1x128xf32> to vector<8x128xf32>
    %148 = arith.mulf %147, %140 : vector<8x128xf32>
    %149 = arith.subf %145, %148 : vector<8x128xf32>
    %c0_96 = arith.constant 0 : index
    %c0_97 = arith.constant 0 : index
    %150 = vector.load %arg3[%c0_96, %c0_97] : memref<1x128xf32, #tpu.memory_space<vmem>>, vector<1x128xf32>
    %151 = vector.broadcast %150 : vector<1x128xf32> to vector<8x128xf32>
    %152 = arith.mulf %151, %149 : vector<8x128xf32>
    %153 = arith.addf %140, %152 : vector<8x128xf32>
    %cst_98 = arith.constant 0.000000e+00 : f32
    %cst_99 = arith.constant 1.000000e+00 : f32
    %154 = vector.broadcast %cst_98 : f32 to vector<8x128xf32>
    %155 = arith.maximumf %154, %153 : vector<8x128xf32>
    %156 = vector.broadcast %cst_99 : f32 to vector<8x128xf32>
    %157 = arith.minimumf %156, %155 : vector<8x128xf32>
    %c2_i32_100 = arith.constant 2 : i32
    %c0_101 = arith.constant 0 : index
    %c0_102 = arith.constant 0 : index
    %158 = vector.load %arg2[%c0_101, %c0_102] : memref<128x128xf32, #tpu.memory_space<vmem>>, vector<128x128xf32>
    %cst_103 = arith.constant dense<0.000000e+00> : vector<8x128xf32>
    %159 = tpu.matmul %157, %158, %cst_103 {dimension_numbers = #tpu.dot_dimension_numbers<[1], [0], [0], [1], [0, 0, 1, 1], [], []>} : vector<8x128xf32>, vector<128x128xf32>, vector<8x128xf32> -> vector<8x128xf32>
    %160 = arith.subf %159, %157 : vector<8x128xf32>
    %c0_104 = arith.constant 0 : index
    %c0_105 = arith.constant 0 : index
    %161 = vector.load %arg4[%c0_104, %c0_105] : memref<8x128xf32, #tpu.memory_space<vmem>>, vector<8x128xf32>
    %162 = arith.addf %160, %161 : vector<8x128xf32>
    %c0_106 = arith.constant 0 : index
    %c0_107 = arith.constant 0 : index
    %163 = vector.load %arg5[%c0_106, %c0_107] : memref<1x128xf32, #tpu.memory_space<vmem>>, vector<1x128xf32>
    %164 = vector.broadcast %163 : vector<1x128xf32> to vector<8x128xf32>
    %165 = arith.mulf %164, %157 : vector<8x128xf32>
    %166 = arith.subf %162, %165 : vector<8x128xf32>
    %c0_108 = arith.constant 0 : index
    %c0_109 = arith.constant 0 : index
    %167 = vector.load %arg3[%c0_108, %c0_109] : memref<1x128xf32, #tpu.memory_space<vmem>>, vector<1x128xf32>
    %168 = vector.broadcast %167 : vector<1x128xf32> to vector<8x128xf32>
    %169 = arith.mulf %168, %166 : vector<8x128xf32>
    %170 = arith.addf %157, %169 : vector<8x128xf32>
    %cst_110 = arith.constant 0.000000e+00 : f32
    %cst_111 = arith.constant 1.000000e+00 : f32
    %171 = vector.broadcast %cst_110 : f32 to vector<8x128xf32>
    %172 = arith.maximumf %171, %170 : vector<8x128xf32>
    %173 = vector.broadcast %cst_111 : f32 to vector<8x128xf32>
    %174 = arith.minimumf %173, %172 : vector<8x128xf32>
    %c3_i32_112 = arith.constant 3 : i32
    %c0_113 = arith.constant 0 : index
    %c0_114 = arith.constant 0 : index
    %175 = vector.load %arg2[%c0_113, %c0_114] : memref<128x128xf32, #tpu.memory_space<vmem>>, vector<128x128xf32>
    %cst_115 = arith.constant dense<0.000000e+00> : vector<8x128xf32>
    %176 = tpu.matmul %174, %175, %cst_115 {dimension_numbers = #tpu.dot_dimension_numbers<[1], [0], [0], [1], [0, 0, 1, 1], [], []>} : vector<8x128xf32>, vector<128x128xf32>, vector<8x128xf32> -> vector<8x128xf32>
    %177 = arith.subf %176, %174 : vector<8x128xf32>
    %c0_116 = arith.constant 0 : index
    %c0_117 = arith.constant 0 : index
    %178 = vector.load %arg4[%c0_116, %c0_117] : memref<8x128xf32, #tpu.memory_space<vmem>>, vector<8x128xf32>
    %179 = arith.addf %177, %178 : vector<8x128xf32>
    %c0_118 = arith.constant 0 : index
    %c0_119 = arith.constant 0 : index
    %180 = vector.load %arg5[%c0_118, %c0_119] : memref<1x128xf32, #tpu.memory_space<vmem>>, vector<1x128xf32>
    %181 = vector.broadcast %180 : vector<1x128xf32> to vector<8x128xf32>
    %182 = arith.mulf %181, %174 : vector<8x128xf32>
    %183 = arith.subf %179, %182 : vector<8x128xf32>
    %c0_120 = arith.constant 0 : index
    %c0_121 = arith.constant 0 : index
    %184 = vector.load %arg3[%c0_120, %c0_121] : memref<1x128xf32, #tpu.memory_space<vmem>>, vector<1x128xf32>
    %185 = vector.broadcast %184 : vector<1x128xf32> to vector<8x128xf32>
    %186 = arith.mulf %185, %183 : vector<8x128xf32>
    %187 = arith.addf %174, %186 : vector<8x128xf32>
    %cst_122 = arith.constant 0.000000e+00 : f32
    %cst_123 = arith.constant 1.000000e+00 : f32
    %188 = vector.broadcast %cst_122 : f32 to vector<8x128xf32>
    %189 = arith.maximumf %188, %187 : vector<8x128xf32>
    %190 = vector.broadcast %cst_123 : f32 to vector<8x128xf32>
    %191 = arith.minimumf %190, %189 : vector<8x128xf32>
    %c4_i32_124 = arith.constant 4 : i32
    %c0_125 = arith.constant 0 : index
    %c0_126 = arith.constant 0 : index
    %192 = vector.load %arg2[%c0_125, %c0_126] : memref<128x128xf32, #tpu.memory_space<vmem>>, vector<128x128xf32>
    %cst_127 = arith.constant dense<0.000000e+00> : vector<8x128xf32>
    %193 = tpu.matmul %191, %192, %cst_127 {dimension_numbers = #tpu.dot_dimension_numbers<[1], [0], [0], [1], [0, 0, 1, 1], [], []>} : vector<8x128xf32>, vector<128x128xf32>, vector<8x128xf32> -> vector<8x128xf32>
    %194 = arith.subf %193, %191 : vector<8x128xf32>
    %c0_128 = arith.constant 0 : index
    %c0_129 = arith.constant 0 : index
    %195 = vector.load %arg4[%c0_128, %c0_129] : memref<8x128xf32, #tpu.memory_space<vmem>>, vector<8x128xf32>
    %196 = arith.addf %194, %195 : vector<8x128xf32>
    %c0_130 = arith.constant 0 : index
    %c0_131 = arith.constant 0 : index
    %197 = vector.load %arg5[%c0_130, %c0_131] : memref<1x128xf32, #tpu.memory_space<vmem>>, vector<1x128xf32>
    %198 = vector.broadcast %197 : vector<1x128xf32> to vector<8x128xf32>
    %199 = arith.mulf %198, %191 : vector<8x128xf32>
    %200 = arith.subf %196, %199 : vector<8x128xf32>
    %c0_132 = arith.constant 0 : index
    %c0_133 = arith.constant 0 : index
    %201 = vector.load %arg3[%c0_132, %c0_133] : memref<1x128xf32, #tpu.memory_space<vmem>>, vector<1x128xf32>
    %202 = vector.broadcast %201 : vector<1x128xf32> to vector<8x128xf32>
    %203 = arith.mulf %202, %200 : vector<8x128xf32>
    %204 = arith.addf %191, %203 : vector<8x128xf32>
    %cst_134 = arith.constant 0.000000e+00 : f32
    %cst_135 = arith.constant 1.000000e+00 : f32
    %205 = vector.broadcast %cst_134 : f32 to vector<8x128xf32>
    %206 = arith.maximumf %205, %204 : vector<8x128xf32>
    %207 = vector.broadcast %cst_135 : f32 to vector<8x128xf32>
    %208 = arith.minimumf %207, %206 : vector<8x128xf32>
    %c0_136 = arith.constant 0 : index
    %c0_137 = arith.constant 0 : index
    %209 = vector.load %arg7[%c0_136, %c0_137] : memref<8x128xf32, #tpu.memory_space<vmem>>, vector<8x128xf32>
    tpu.vector_store %arg7[%c0_136, %c0_137], %208 {strides = array<i32>} : memref<8x128xf32, #tpu.memory_space<vmem>>, vector<8x128xf32>,
    return
  }
  func.func @transform_0(%arg0: i32) -> (i32, i32) {
    %c0_i32 = arith.constant 0 : i32
    %c0_i32_0 = arith.constant 0 : i32
    return %arg0, %c0_i32 : i32, i32
  }
  func.func @transform_1(%arg0: i32) -> (i32, i32) {
    %c0_i32 = arith.constant 0 : i32
    %c0_i32_0 = arith.constant 0 : i32
    %c0_i32_1 = arith.constant 0 : i32
    return %c0_i32, %c0_i32_0 : i32, i32
  }
  func.func @transform_2(%arg0: i32) -> (i32, i32) {
    %c0_i32 = arith.constant 0 : i32
    %c0_i32_0 = arith.constant 0 : i32
    %c0_i32_1 = arith.constant 0 : i32
    return %c0_i32, %c0_i32_0 : i32, i32
  }
  func.func @transform_3(%arg0: i32) -> (i32, i32) {
    %c0_i32 = arith.constant 0 : i32
    %c0_i32_0 = arith.constant 0 : i32
    return %arg0, %c0_i32 : i32, i32
  }
  func.func @transform_4(%arg0: i32) -> (i32, i32) {
    %c0_i32 = arith.constant 0 : i32
    %c0_i32_0 = arith.constant 0 : i32
    %c0_i32_1 = arith.constant 0 : i32
    return %c0_i32, %c0_i32_0 : i32, i32
  }
  func.func @transform_5(%arg0: i32) -> (i32, i32) {
    %c0_i32 = arith.constant 0 : i32
    %c0_i32_0 = arith.constant 0 : i32
    return %arg0, %c0_i32 : i32, i32
  }
  func.func @transform_6(%arg0: i32) -> (i32, i32) {
    %c0_i32 = arith.constant 0 : i32
    %c0_i32_0 = arith.constant 0 : i32
    return %arg0, %c0_i32 : i32, i32
  }
}

</mosaic_0001>

<bundles_post_ra>
// kernel: tpu_custom_call.1
= control target key start
LH: loop header
LB: loop body
LE: loop exit
PB: predicated region body
PF: predicated region fallthrough
CT: control target
= control target key end

     0   :  { %12 = vsyncpa [#allocation3], 0  ;;  %s1045_s0 = inlined_call_operand.hbm [shape: f32[8,128], index: 0, kind: input, shape index: {}]   ;;  %s1046_s1 = inlined_call_operand.hbm [shape: f32[128,128], index: 1, kind: input, shape index: {}]   ;;  %s1047_s2 = inlined_call_operand.vmem [shape: f32[1,128], index: 2, kind: input, shape index: {}]   ;;  %s1048_s3 = inlined_call_operand.hbm [shape: f32[8,128], index: 3, kind: input, shape index: {}]   ;;  %s1049_s4 = inlined_call_operand.vmem [shape: f32[1,128], index: 4, kind: input, shape index: {}]   ;;  %s1050_s5 = inlined_call_operand.hbm [shape: f32[8,128], index: 5, kind: output, shape index: {0}]   ;;  %s1051_s6 = inlined_call_operand.hbm [shape: f32[8,128], index: 6, kind: output, shape index: {1}]  }
   0x1   :  { %13 = vsyncpa [#allocation6], 0 }
   0x2   :  { %14 = vsyncpa [#allocation4], 0  ;;  %s31_s23 = sshll.u32 %s1046_s1, 4  ;;  %s32_s23 = int_to_ptr.hbm [resolvable:$true] %s31_s23 }
   0x3   :  { %15 = vsyncpa [#allocation10], 0  ;;  %s687_s24 = smov [#allocation5]   ;;  %s21_s28 = sshll.u32 %s1045_s0, 4  ;;  %s22_s28 = int_to_ptr.hbm [resolvable:$true] %s21_s28 }
   0x4   :  { %s33_s25 = sshll.u32 %s687_s24, 4  ;;  %s688_s29 = smov 128   ;;  %s34_s25 = int_to_ptr.vmem [resolvable:$true] %s33_s25 }
   0x5   :  { %s689_s30 = smov 8   ;;  %s690_s7 = smov [#allocation2]  }
   0x6   :  { %39 = dma.hbm_to_vmem [thread:$0]  %s32_s23, 2048, %s34_s25, [#allocation6], %s688_s29, %s688_s29, %s689_s30  }
   0x7   :  { %s23_s8 = sshll.u32 %s690_s7, 4  ;;  %s47_s11 = sshll.u32 %s1048_s3, 4  ;;  %s24_s8 = int_to_ptr.vmem [resolvable:$true] %s23_s8  ;;  %s48_s11 = int_to_ptr.hbm [resolvable:$true] %s47_s11 }
   0x8   :  { %26 = dma.hbm_to_vmem [thread:$0]  %s22_s28, 128, %s24_s8, [#allocation3]  }
   0x9   :  { %s691_s1 = smov [#allocation7]  }
   0xa   :  { %s49_s12 = sshll.u32 %s691_s1, 4  ;;  %s50_s12 = int_to_ptr.vmem [resolvable:$true] %s49_s12 }
   0xb   :  { %52 = dma.hbm_to_vmem [thread:$0]  %s48_s11, 128, %s50_s12, [#allocation6]  }
   0xc   :  { %679 = dma.done.wait [#allocation3], 128  }
   0xd   :  { %680 = vsyncadd [#allocation3], 4294967168 }
   0xe   :  { %681 = dma.done.wait [#allocation6], 2176  }
   0xf   :  { %682 = vsyncadd [#allocation6], 4294965120  ;;  %v739_v0 = vld [vmem:[#allocation5 + $0x78] sm:$0xff]  ;;  %v741_v1 = vld [vmem:[#allocation5 + $0x70] sm:$0xff]  ;;  %v692_v19 = vmov 0.0   ;;  %s520_s17 = sshll.u32 %s1050_s5, 4  ;;  %s521_s17 = int_to_ptr.hbm [resolvable:$true] %s520_s17 }
  0x10   :  { %86 = vmatpush.msra.mxu0 %v739_v0  ;;  %121 = vmatpush.msra.mxu1 %v739_v0  ;;  %v745_v2 = vld [vmem:[#allocation5 + $0x68] sm:$0xff]  ;;  %v751_v3 = vld [vmem:[#allocation5 + $0x60] sm:$0xff]  ;;  %v757_v4 = vld [vmem:[#allocation5 + $0x58] sm:$0xff]  ;;  %s693_s18 = smov [#allocation8]   ;;  %s694_s20 = smov [#allocation9]  }
  0x11   :  { %146 = vmatpush.msra.mxu2 %v739_v0  ;;  %171 = vmatpush.msra.mxu3 %v739_v0  ;;  %v763_v5 = vld [vmem:[#allocation5 + $0x50] sm:$0xff]  ;;  %v769_v6 = vld [vmem:[#allocation5 + $0x48] sm:$0xff]  ;;  %v775_v7 = vld [vmem:[#allocation5 + $0x40] sm:$0xff]  ;;  %s518_s19 = sshll.u32 %s693_s18, 4  ;;  %s529_s21 = sshll.u32 %s694_s20, 4  ;;  %s519_s19 = int_to_ptr.vmem [resolvable:$true] %s518_s19  ;;  %s530_s21 = int_to_ptr.vmem [resolvable:$true] %s529_s21 }
  0x12   :  { %87 = vmatpush.msra.mxu0 %v741_v1  ;;  %122 = vmatpush.msra.mxu1 %v741_v1  ;;  %v781_v8 = vld [vmem:[#allocation5 + $0x38] sm:$0xff]  ;;  %v787_v9 = vld [vmem:[#allocation5 + $0x30] sm:$0xff]  ;;  %v793_v10 = vld [vmem:[#allocation5 + $0x28] sm:$0xff]  ;;  %s531_s24 = sshll.u32 %s1051_s6, 4  ;;  %s532_s24 = int_to_ptr.hbm [resolvable:$true] %s531_s24 }
  0x13   :  { %147 = vmatpush.msra.mxu2 %v741_v1  ;;  %172 = vmatpush.msra.mxu3 %v741_v1  ;;  %v799_v11 = vld [vmem:[#allocation5 + $0x20] sm:$0xff]  ;;  %v804_v12 = vld [vmem:[#allocation2] sm:$0xff]  ;;  %v813_v14 = vld [vmem:[#allocation5 + $0x10] sm:$0xff] }
  0x14   :  { %88 = vmatpush.msra.mxu0 %v745_v2  ;;  %123 = vmatpush.msra.mxu1 %v745_v2  ;;  %v807_v13 = vld [vmem:[#allocation5 + $0x18] sm:$0xff]  ;;  %v68_v15 = vmax.f32 %v804_v12, 0.0  ;;  %v820_v16 = vld [vmem:[#allocation5 + $0x8] sm:$0xff]  ;;  %v826_v17 = vld [vmem:[#allocation5] sm:$0xff]  ;;  %vm106_vm0 = vcmp.ge.f32.partialorder %v804_v12, 0.0  ;;  %vm107_vm1 = vcmp.le.f32.partialorder %v804_v12, 1.0 }
  0x15   :  { %148 = vmatpush.msra.mxu2 %v745_v2  ;;  %173 = vmatpush.msra.mxu3 %v745_v2  ;;  %vm108_vm2 = vmand %vm106_vm0, %vm107_vm1  ;;  %v923_v23 = vld [vmem:[%s1047_s2] ss:$0 sm:$0xff] }
  0x16   :  { %89 = vmatpush.msra.mxu0 %v751_v3  ;;  %124 = vmatpush.msra.mxu1 %v751_v3  ;;  %v69_v18 = vmin.f32 %v68_v15, 1.0  ;;  %v547_v20 = vsel %vm108_vm2, 1.0, %v692_v19  ;;  %v557_v19 = vld [vmem:[%s1049_s4] ss:$0 sm:$0xff] }
  0x17   :  { %149 = vmatpush.msra.mxu2 %v751_v3  ;;  %174 = vmatpush.msra.mxu3 %v751_v3 }
  0x18   :  { %90 = vmatpush.msra.mxu0 %v757_v4  ;;  %125 = vmatpush.msra.mxu1 %v757_v4 }
  0x19   :  { %150 = vmatpush.msra.mxu2 %v757_v4  ;;  %175 = vmatpush.msra.mxu3 %v757_v4 }
  0x1a   :  { %91 = vmatpush.msra.mxu0 %v763_v5  ;;  %126 = vmatpush.msra.mxu1 %v763_v5 }
  0x1b   :  { %151 = vmatpush.msra.mxu2 %v763_v5  ;;  %176 = vmatpush.msra.mxu3 %v763_v5 }
  0x1c   :  { %92 = vmatpush.msra.mxu0 %v769_v6  ;;  %127 = vmatpush.msra.mxu1 %v769_v6 }
  0x1d   :  { %152 = vmatpush.msra.mxu2 %v769_v6  ;;  %177 = vmatpush.msra.mxu3 %v769_v6 }
  0x1e   :  { %93 = vmatpush.msra.mxu0 %v775_v7  ;;  %128 = vmatpush.msra.mxu1 %v775_v7 }
  0x1f   :  { %153 = vmatpush.msra.mxu2 %v775_v7  ;;  %178 = vmatpush.msra.mxu3 %v775_v7 }
  0x20   :  { %94 = vmatpush.msra.mxu0 %v781_v8  ;;  %129 = vmatpush.msra.mxu1 %v781_v8 }
  0x21   :  { %154 = vmatpush.msra.mxu2 %v781_v8  ;;  %179 = vmatpush.msra.mxu3 %v781_v8 }
  0x22   :  { %95 = vmatpush.msra.mxu0 %v787_v9  ;;  %130 = vmatpush.msra.mxu1 %v787_v9 }
  0x23   :  { %155 = vmatpush.msra.mxu2 %v787_v9  ;;  %180 = vmatpush.msra.mxu3 %v787_v9 }
  0x24   :  { %96 = vmatpush.msra.mxu0 %v793_v10  ;;  %131 = vmatpush.msra.mxu1 %v793_v10 }
  0x25   :  { %156 = vmatpush.msra.mxu2 %v793_v10  ;;  %181 = vmatpush.msra.mxu3 %v793_v10 }
  0x26   :  { %97 = vmatpush.msra.mxu0 %v799_v11  ;;  %132 = vmatpush.msra.mxu1 %v799_v11 }
  0x27   :  { %157 = vmatpush.msra.mxu2 %v799_v11  ;;  %182 = vmatpush.msra.mxu3 %v799_v11 }
  0x28   :  { %98 = vmatpush.msra.mxu0 %v807_v13  ;;  %133 = vmatpush.msra.mxu1 %v807_v13 }
  0x29   :  { %158 = vmatpush.msra.mxu2 %v807_v13  ;;  %183 = vmatpush.msra.mxu3 %v807_v13 }
  0x2a   :  { %99 = vmatpush.msra.mxu0 %v813_v14  ;;  %134 = vmatpush.msra.mxu1 %v813_v14 }
  0x2b   :  { %159 = vmatpush.msra.mxu2 %v813_v14  ;;  %184 = vmatpush.msra.mxu3 %v813_v14 }
  0x2c   :  { %100 = vmatpush.msra.mxu0 %v820_v16  ;;  %135 = vmatpush.msra.mxu1 %v820_v16 }
  0x2d   :  { %160 = vmatpush.msra.mxu2 %v820_v16  ;;  %185 = vmatpush.msra.mxu3 %v820_v16 }
  0x2e   :  { %101 = vmatpush.msra.mxu0 %v826_v17  ;;  %136 = vmatpush.msra.mxu1 %v826_v17 }
  0x2f   :  { %102 = vmatmul.f32.vlgmr.msra.gmra.mxu0 %v69_v18  ;;  %161 = vmatpush.msra.mxu2 %v826_v17 }
  0x30   :  { %186 = vmatpush.msra.mxu3 %v826_v17  ;;  %196 = vmatpush.msrb.mxu0 %v739_v0 }
  0x31   :  { %221 = vmatpush.msrb.mxu1 %v739_v0  ;;  %246 = vmatpush.msrb.mxu2 %v739_v0 }
  0x32   :  { %197 = vmatpush.msrb.mxu0 %v741_v1  ;;  %271 = vmatpush.msrb.mxu3 %v739_v0 }
  0x33   :  { %222 = vmatpush.msrb.mxu1 %v741_v1  ;;  %247 = vmatpush.msrb.mxu2 %v741_v1 }
  0x34   :  { %198 = vmatpush.msrb.mxu0 %v745_v2  ;;  %272 = vmatpush.msrb.mxu3 %v741_v1 }
  0x35   :  { %223 = vmatpush.msrb.mxu1 %v745_v2  ;;  %248 = vmatpush.msrb.mxu2 %v745_v2 }
  0x36   :  { %199 = vmatpush.msrb.mxu0 %v751_v3  ;;  %273 = vmatpush.msrb.mxu3 %v745_v2 }
  0x37   :  { %224 = vmatpush.msrb.mxu1 %v751_v3  ;;  %249 = vmatpush.msrb.mxu2 %v751_v3 }
  0x38   :  { %200 = vmatpush.msrb.mxu0 %v757_v4  ;;  %274 = vmatpush.msrb.mxu3 %v751_v3 }
  0x39   :  { %225 = vmatpush.msrb.mxu1 %v757_v4  ;;  %250 = vmatpush.msrb.mxu2 %v757_v4 }
  0x3a   :  { %201 = vmatpush.msrb.mxu0 %v763_v5  ;;  %275 = vmatpush.msrb.mxu3 %v757_v4 }
  0x3b   :  { %226 = vmatpush.msrb.mxu1 %v763_v5  ;;  %251 = vmatpush.msrb.mxu2 %v763_v5 }
  0x3c   :  { %202 = vmatpush.msrb.mxu0 %v769_v6  ;;  %276 = vmatpush.msrb.mxu3 %v763_v5 }
  0x3d   :  { %227 = vmatpush.msrb.mxu1 %v769_v6  ;;  %252 = vmatpush.msrb.mxu2 %v769_v6 }
  0x3e   :  { %203 = vmatpush.msrb.mxu0 %v775_v7  ;;  %277 = vmatpush.msrb.mxu3 %v769_v6 }
  0x3f   :  { %228 = vmatpush.msrb.mxu1 %v775_v7  ;;  %253 = vmatpush.msrb.mxu2 %v775_v7 }
  0x40   :  { %204 = vmatpush.msrb.mxu0 %v781_v8  ;;  %278 = vmatpush.msrb.mxu3 %v775_v7 }
  0x41   :  { %229 = vmatpush.msrb.mxu1 %v781_v8  ;;  %254 = vmatpush.msrb.mxu2 %v781_v8 }
  0x42   :  { %205 = vmatpush.msrb.mxu0 %v787_v9  ;;  %279 = vmatpush.msrb.mxu3 %v781_v8 }
  0x43   :  { %230 = vmatpush.msrb.mxu1 %v787_v9  ;;  %255 = vmatpush.msrb.mxu2 %v787_v9 }
  0x44   :  { %206 = vmatpush.msrb.mxu0 %v793_v10  ;;  %280 = vmatpush.msrb.mxu3 %v787_v9 }
  0x45   :  { %231 = vmatpush.msrb.mxu1 %v793_v10  ;;  %256 = vmatpush.msrb.mxu2 %v793_v10 }
  0x46   :  { %207 = vmatpush.msrb.mxu0 %v799_v11  ;;  %281 = vmatpush.msrb.mxu3 %v793_v10 }
  0x47   :  { %232 = vmatpush.msrb.mxu1 %v799_v11  ;;  %257 = vmatpush.msrb.mxu2 %v799_v11 }
  0x48   :  { %208 = vmatpush.msrb.mxu0 %v807_v13  ;;  %282 = vmatpush.msrb.mxu3 %v799_v11 }
  0x49   :  { %233 = vmatpush.msrb.mxu1 %v807_v13  ;;  %258 = vmatpush.msrb.mxu2 %v807_v13 }
  0x4a   :  { %209 = vmatpush.msrb.mxu0 %v813_v14  ;;  %283 = vmatpush.msrb.mxu3 %v807_v13 }
  0x4b   :  { %234 = vmatpush.msrb.mxu1 %v813_v14  ;;  %259 = vmatpush.msrb.mxu2 %v813_v14 }
  0x4c   :  { %210 = vmatpush.msrb.mxu0 %v820_v16  ;;  %284 = vmatpush.msrb.mxu3 %v813_v14 }
  0x4d   :  { %235 = vmatpush.msrb.mxu1 %v820_v16  ;;  %260 = vmatpush.msrb.mxu2 %v820_v16 }
  0x4e   :  { %211 = vmatpush.msrb.mxu0 %v826_v17  ;;  %285 = vmatpush.msrb.mxu3 %v820_v16 }
  0x4f   :  { %236 = vmatpush.msrb.mxu1 %v826_v17  ;;  %261 = vmatpush.msrb.mxu2 %v826_v17 }
  0x50   :  { %286 = vmatpush.msrb.mxu3 %v826_v17  ;;  %296 = vmatpush.msra.mxu0 %v739_v0 }
  0x52   :  { %297 = vmatpush.msra.mxu0 %v741_v1 }
  0x54   :  { %298 = vmatpush.msra.mxu0 %v745_v2 }
  0x56   :  { %299 = vmatpush.msra.mxu0 %v751_v3 }
  0x58   :  { %300 = vmatpush.msra.mxu0 %v757_v4 }
  0x5a   :  { %301 = vmatpush.msra.mxu0 %v763_v5 }
  0x5c   :  { %302 = vmatpush.msra.mxu0 %v769_v6 }
  0x5e   :  { %303 = vmatpush.msra.mxu0 %v775_v7 }
  0x60   :  { %304 = vmatpush.msra.mxu0 %v781_v8 }
  0x62   :  { %305 = vmatpush.msra.mxu0 %v787_v9 }
  0x64   :  { %306 = vmatpush.msra.mxu0 %v793_v10 }
  0x66   :  { %307 = vmatpush.msra.mxu0 %v799_v11 }
  0x68   :  { %308 = vmatpush.msra.mxu0 %v807_v13 }
  0x6a   :  { %309 = vmatpush.msra.mxu0 %v813_v14 }
  0x6c   :  { %310 = vmatpush.msra.mxu0 %v820_v16 }
  0x6e   :  { %311 = vmatpush.msra.mxu0 %v826_v17 }
  0xac   :  { %v103_v21 = vpop.f32.mrf.mxu0 }
  0xad   :  { %v111_v22 = vmul.f32 %v547_v20, %v103_v21  ;;  %v384_v21 = vld [vmem:[#allocation7] sm:$0xff] }
  0xaf   :  { %v112_v24 = vsub.f32 %v111_v22, %v804_v12 }
  0xb1   :  { %v117_v25 = vmul.f32 %v923_v23, %v112_v24 }
  0xb3   :  { %v118_v26 = vadd.f32 %v117_v25, %v804_v12 }
  0xb5   :  { %v119_v27 = vmax.f32 %v118_v26, 0.0  ;;  %v558_v26 = vld [vmem:[%s1047_s2] ss:$0 sm:$0xff] }
  0xb7   :  { %v120_v28 = vmin.f32 %v119_v27, 1.0 }
  0xb9   :  { %137 = vmatmul.f32.vlgmr.msra.gmra.mxu1 %v120_v28 }
  0xba   :  { %321 = vmatpush.msra.mxu1 %v739_v0 }
  0xbc   :  { %322 = vmatpush.msra.mxu1 %v741_v1 }
  0xbe   :  { %323 = vmatpush.msra.mxu1 %v745_v2 }
  0xc0   :  { %324 = vmatpush.msra.mxu1 %v751_v3 }
  0xc2   :  { %325 = vmatpush.msra.mxu1 %v757_v4 }
  0xc4   :  { %326 = vmatpush.msra.mxu1 %v763_v5 }
  0xc6   :  { %327 = vmatpush.msra.mxu1 %v769_v6 }
  0xc8   :  { %328 = vmatpush.msra.mxu1 %v775_v7 }
  0xca   :  { %329 = vmatpush.msra.mxu1 %v781_v8 }
  0xcc   :  { %330 = vmatpush.msra.mxu1 %v787_v9 }
  0xce   :  { %331 = vmatpush.msra.mxu1 %v793_v10 }
  0xd0   :  { %332 = vmatpush.msra.mxu1 %v799_v11 }
  0xd2   :  { %333 = vmatpush.msra.mxu1 %v807_v13 }
  0xd4   :  { %334 = vmatpush.msra.mxu1 %v813_v14 }
  0xd6   :  { %335 = vmatpush.msra.mxu1 %v820_v16 }
  0xd8   :  { %336 = vmatpush.msra.mxu1 %v826_v17 }
 0x136   :  { %v138_v29 = vpop.f32.mrf.mxu1 }
 0x137   :  { %v141_v30 = vsub.f32 %v138_v29, %v120_v28 }
 0x139   :  { %v142_v31 = vmul.f32 %v923_v23, %v141_v30 }
 0x13b   :  { %v143_v32 = vadd.f32 %v142_v31, %v120_v28 }
 0x13d   :  { %v144_v33 = vmax.f32 %v143_v32, 0.0 }
 0x13f   :  { %v145_v34 = vmin.f32 %v144_v33, 1.0 }
 0x141   :  { %162 = vmatmul.f32.vlgmr.msra.gmra.mxu2 %v145_v34 }
 0x142   :  { %363 = vmatpush.msra.mxu2 %v739_v0 }
 0x144   :  { %364 = vmatpush.msra.mxu2 %v741_v1 }
 0x146   :  { %365 = vmatpush.msra.mxu2 %v745_v2 }
 0x148   :  { %366 = vmatpush.msra.mxu2 %v751_v3 }
 0x14a   :  { %367 = vmatpush.msra.mxu2 %v757_v4 }
 0x14c   :  { %368 = vmatpush.msra.mxu2 %v763_v5 }
 0x14e   :  { %369 = vmatpush.msra.mxu2 %v769_v6 }
 0x150   :  { %370 = vmatpush.msra.mxu2 %v775_v7 }
 0x152   :  { %371 = vmatpush.msra.mxu2 %v781_v8 }
 0x154   :  { %372 = vmatpush.msra.mxu2 %v787_v9 }
 0x156   :  { %373 = vmatpush.msra.mxu2 %v793_v10 }
 0x158   :  { %374 = vmatpush.msra.mxu2 %v799_v11 }
 0x15a   :  { %375 = vmatpush.msra.mxu2 %v807_v13 }
 0x15c   :  { %376 = vmatpush.msra.mxu2 %v813_v14 }
 0x15e   :  { %377 = vmatpush.msra.mxu2 %v820_v16 }
 0x160   :  { %378 = vmatpush.msra.mxu2 %v826_v17 }
 0x1c4   :  { %v163_v35 = vpop.f32.mrf.mxu2 }
 0x1c5   :  { %v166_v36 = vsub.f32 %v163_v35, %v145_v34 }
 0x1c7   :  { %v167_v37 = vmul.f32 %v923_v23, %v166_v36 }
 0x1c9   :  { %v168_v38 = vadd.f32 %v167_v37, %v145_v34 }
 0x1cb   :  { %v169_v39 = vmax.f32 %v168_v38, 0.0 }
 0x1cd   :  { %v170_v40 = vmin.f32 %v169_v39, 1.0 }
 0x1cf   :  { %187 = vmatmul.f32.vlgmr.msra.gmra.mxu3 %v170_v40 }
 0x1d0   :  { %400 = vmatpush.msra.mxu3 %v739_v0 }
 0x1d2   :  { %401 = vmatpush.msra.mxu3 %v741_v1 }
 0x1d4   :  { %402 = vmatpush.msra.mxu3 %v745_v2 }
 0x1d6   :  { %403 = vmatpush.msra.mxu3 %v751_v3 }
 0x1d8   :  { %404 = vmatpush.msra.mxu3 %v757_v4 }
 0x1da   :  { %405 = vmatpush.msra.mxu3 %v763_v5 }
 0x1dc   :  { %406 = vmatpush.msra.mxu3 %v769_v6 }
 0x1de   :  { %407 = vmatpush.msra.mxu3 %v775_v7 }
 0x1e0   :  { %408 = vmatpush.msra.mxu3 %v781_v8 }
 0x1e2   :  { %409 = vmatpush.msra.mxu3 %v787_v9 }
 0x1e4   :  { %410 = vmatpush.msra.mxu3 %v793_v10 }
 0x1e6   :  { %411 = vmatpush.msra.mxu3 %v799_v11 }
 0x1e8   :  { %412 = vmatpush.msra.mxu3 %v807_v13 }
 0x1ea   :  { %413 = vmatpush.msra.mxu3 %v813_v14 }
 0x1ec   :  { %414 = vmatpush.msra.mxu3 %v820_v16 }
 0x1ee   :  { %415 = vmatpush.msra.mxu3 %v826_v17 }
 0x252   :  { %v188_v41 = vpop.f32.mrf.mxu3 }
 0x253   :  { %v191_v42 = vsub.f32 %v188_v41, %v170_v40 }
 0x255   :  { %v192_v43 = vmul.f32 %v923_v23, %v191_v42 }
 0x257   :  { %v193_v44 = vadd.f32 %v192_v43, %v170_v40 }
 0x259   :  { %v194_v45 = vmax.f32 %v193_v44, 0.0 }
 0x25b   :  { %v195_v46 = vmin.f32 %v194_v45, 1.0 }
 0x25d   :  { %212 = vmatmul.f32.vlgmr.msrb.gmra.mxu0 %v195_v46 }
 0x25e   :  { %428 = vmatpush.msrb.mxu0 %v739_v0 }
 0x260   :  { %429 = vmatpush.msrb.mxu0 %v741_v1 }
 0x262   :  { %430 = vmatpush.msrb.mxu0 %v745_v2 }
 0x264   :  { %431 = vmatpush.msrb.mxu0 %v751_v3 }
 0x266   :  { %432 = vmatpush.msrb.mxu0 %v757_v4 }
 0x268   :  { %433 = vmatpush.msrb.mxu0 %v763_v5 }
 0x26a   :  { %434 = vmatpush.msrb.mxu0 %v769_v6 }
 0x26c   :  { %435 = vmatpush.msrb.mxu0 %v775_v7 }
 0x26e   :  { %436 = vmatpush.msrb.mxu0 %v781_v8 }
 0x270   :  { %437 = vmatpush.msrb.mxu0 %v787_v9 }
 0x272   :  { %438 = vmatpush.msrb.mxu0 %v793_v10 }
 0x274   :  { %439 = vmatpush.msrb.mxu0 %v799_v11 }
 0x276   :  { %440 = vmatpush.msrb.mxu0 %v807_v13 }
 0x278   :  { %441 = vmatpush.msrb.mxu0 %v813_v14 }
 0x27a   :  { %442 = vmatpush.msrb.mxu0 %v820_v16 }
 0x27c   :  { %443 = vmatpush.msrb.mxu0 %v826_v17 }
 0x2da   :  { %v213_v47 = vpop.f32.mrf.mxu0 }
 0x2db   :  { %v216_v48 = vsub.f32 %v213_v47, %v195_v46 }
 0x2dd   :  { %v217_v49 = vmul.f32 %v923_v23, %v216_v48 }
 0x2df   :  { %v218_v50 = vadd.f32 %v217_v49, %v195_v46 }
 0x2e1   :  { %v219_v51 = vmax.f32 %v218_v50, 0.0 }
 0x2e3   :  { %v220_v52 = vmin.f32 %v219_v51, 1.0 }
 0x2e5   :  { %237 = vmatmul.f32.vlgmr.msrb.gmra.mxu1 %v220_v52 }
 0x2e6   :  { %456 = vmatpush.msrb.mxu1 %v739_v0 }
 0x2e8   :  { %457 = vmatpush.msrb.mxu1 %v741_v1 }
 0x2ea   :  { %458 = vmatpush.msrb.mxu1 %v745_v2 }
 0x2ec   :  { %459 = vmatpush.msrb.mxu1 %v751_v3 }
 0x2ee   :  { %460 = vmatpush.msrb.mxu1 %v757_v4 }
 0x2f0   :  { %461 = vmatpush.msrb.mxu1 %v763_v5 }
 0x2f2   :  { %462 = vmatpush.msrb.mxu1 %v769_v6 }
 0x2f4   :  { %463 = vmatpush.msrb.mxu1 %v775_v7 }
 0x2f6   :  { %464 = vmatpush.msrb.mxu1 %v781_v8 }
 0x2f8   :  { %465 = vmatpush.msrb.mxu1 %v787_v9 }
 0x2fa   :  { %466 = vmatpush.msrb.mxu1 %v793_v10 }
 0x2fc   :  { %467 = vmatpush.msrb.mxu1 %v799_v11 }
 0x2fe   :  { %468 = vmatpush.msrb.mxu1 %v807_v13 }
 0x300   :  { %469 = vmatpush.msrb.mxu1 %v813_v14 }
 0x302   :  { %470 = vmatpush.msrb.mxu1 %v820_v16 }
 0x304   :  { %471 = vmatpush.msrb.mxu1 %v826_v17 }
 0x362   :  { %v238_v53 = vpop.f32.mrf.mxu1 }
 0x363   :  { %v241_v54 = vsub.f32 %v238_v53, %v220_v52 }
 0x365   :  { %v242_v55 = vmul.f32 %v923_v23, %v241_v54 }
 0x367   :  { %v243_v56 = vadd.f32 %v242_v55, %v220_v52 }
 0x369   :  { %v244_v57 = vmax.f32 %v243_v56, 0.0 }
 0x36b   :  { %v245_v58 = vmin.f32 %v244_v57, 1.0 }
 0x36d   :  { %262 = vmatmul.f32.vlgmr.msrb.gmra.mxu2 %v245_v58 }
 0x36e   :  { %484 = vmatpush.msrb.mxu2 %v739_v0 }
 0x370   :  { %485 = vmatpush.msrb.mxu2 %v741_v1 }
 0x372   :  { %486 = vmatpush.msrb.mxu2 %v745_v2 }
 0x374   :  { %487 = vmatpush.msrb.mxu2 %v751_v3 }
 0x376   :  { %488 = vmatpush.msrb.mxu2 %v757_v4 }
 0x378   :  { %489 = vmatpush.msrb.mxu2 %v763_v5 }
 0x37a   :  { %490 = vmatpush.msrb.mxu2 %v769_v6 }
 0x37c   :  { %491 = vmatpush.msrb.mxu2 %v775_v7 }
 0x37e   :  { %492 = vmatpush.msrb.mxu2 %v781_v8 }
 0x380   :  { %493 = vmatpush.msrb.mxu2 %v787_v9 }
 0x382   :  { %494 = vmatpush.msrb.mxu2 %v793_v10 }
 0x384   :  { %495 = vmatpush.msrb.mxu2 %v799_v11 }
 0x386   :  { %496 = vmatpush.msrb.mxu2 %v807_v13 }
 0x388   :  { %497 = vmatpush.msrb.mxu2 %v813_v14 }
 0x38a   :  { %498 = vmatpush.msrb.mxu2 %v820_v16 }
 0x38c   :  { %499 = vmatpush.msrb.mxu2 %v826_v17 }
 0x3f0   :  { %v263_v59 = vpop.f32.mrf.mxu2 }
 0x3f1   :  { %v266_v60 = vsub.f32 %v263_v59, %v245_v58 }
 0x3f3   :  { %v267_v61 = vmul.f32 %v923_v23, %v266_v60 }
 0x3f5   :  { %v268_v62 = vadd.f32 %v267_v61, %v245_v58 }
 0x3f7   :  { %v269_v63 = vmax.f32 %v268_v62, 0.0 }
 0x3f9   :  { %v270_v0 = vmin.f32 %v269_v63, 1.0 }
 0x3fb   :  { %287 = vmatmul.f32.vlgmr.msrb.gmra.mxu3 %v270_v0 }
 0x47e   :  { %v288_v1 = vpop.f32.mrf.mxu3 }
 0x47f   :  { %v291_v2 = vsub.f32 %v288_v1, %v270_v0 }
 0x481   :  { %v292_v3 = vmul.f32 %v923_v23, %v291_v2 }
 0x483   :  { %v293_v4 = vadd.f32 %v292_v3, %v270_v0 }
 0x485   :  { %v294_v5 = vmax.f32 %v293_v4, 0.0 }
 0x487   :  { %v295_v6 = vmin.f32 %v294_v5, 1.0 }
 0x489   :  { %312 = vmatmul.f32.vlgmr.msra.gmra.mxu0 %v295_v6 }
 0x506   :  { %v313_v7 = vpop.f32.mrf.mxu0 }
 0x507   :  { %v316_v8 = vsub.f32 %v313_v7, %v295_v6 }
 0x509   :  { %v317_v9 = vmul.f32 %v923_v23, %v316_v8 }
 0x50b   :  { %v318_v10 = vadd.f32 %v317_v9, %v295_v6 }
 0x50d   :  { %v319_v11 = vmax.f32 %v318_v10, 0.0 }
 0x50f   :  { %v320_v12 = vmin.f32 %v319_v11, 1.0 }
 0x511   :  { %337 = vmatmul.f32.vlgmr.msra.gmra.mxu1 %v320_v12 }
 0x58e   :  { %v338_v13 = vpop.f32.mrf.mxu1 }
 0x58f   :  { %v341_v14 = vsub.f32 %v338_v13, %v320_v12 }
 0x591   :  { %v342_v15 = vmul.f32 %v923_v23, %v341_v14 }
 0x593   :  { %v343_v16 = vadd.f32 %v342_v15, %v320_v12 }
 0x595   :  { %v344_v17 = vmax.f32 %v343_v16, 0.0 }
 0x597   :  { %v345_v18 = vmin.f32 %v344_v17, 1.0 }
 0x599   :  { %346 = vst [vmem:[#allocation8] sm:$0xff] %v345_v18  ;;  %379 = vmatmul.f32.vlgmr.msra.gmra.mxu2 %v345_v18  ;;  %v390_v25 = vmul.f32 %v557_v19, %v345_v18 }
 0x59a   :  { %523 = dma.vmem_to_hbm [thread:$0]  %s519_s19, 128, %s521_s17, [#allocation4]  }
 0x61c   :  { %v380_v20 = vpop.f32.mrf.mxu2 }
 0x61d   :  { %v383_v22 = vsub.f32 %v380_v20, %v345_v18 }
 0x61f   :  { %v385_v24 = vadd.f32 %v384_v21, %v383_v22 }
 0x621   :  { %v391_v27 = vsub.f32 %v385_v24, %v390_v25 }
 0x623   :  { %v396_v23 = vmul.f32 %v558_v26, %v391_v27 }
 0x625   :  { %v397_v28 = vadd.f32 %v396_v23, %v345_v18 }
 0x627   :  { %v398_v29 = vmax.f32 %v397_v28, 0.0 }
 0x629   :  { %v399_v30 = vmin.f32 %v398_v29, 1.0 }
 0x62b   :  { %416 = vmatmul.f32.vlgmr.msra.gmra.mxu3 %v399_v30  ;;  %v422_v34 = vmul.f32 %v557_v19, %v399_v30 }
 0x6ae   :  { %v417_v31 = vpop.f32.mrf.mxu3 }
 0x6af   :  { %v420_v32 = vsub.f32 %v417_v31, %v399_v30 }
 0x6b1   :  { %v421_v33 = vadd.f32 %v420_v32, %v384_v21 }
 0x6b3   :  { %v423_v35 = vsub.f32 %v421_v33, %v422_v34 }
 0x6b5   :  { %v424_v36 = vmul.f32 %v558_v26, %v423_v35 }
 0x6b7   :  { %v425_v37 = vadd.f32 %v424_v36, %v399_v30 }
 0x6b9   :  { %v426_v38 = vmax.f32 %v425_v37, 0.0 }
 0x6bb   :  { %v427_v39 = vmin.f32 %v426_v38, 1.0 }
 0x6bd   :  { %444 = vmatmul.f32.vlgmr.msrb.gmra.mxu0 %v427_v39  ;;  %v450_v43 = vmul.f32 %v557_v19, %v427_v39 }
 0x73a   :  { %v445_v40 = vpop.f32.mrf.mxu0 }
 0x73b   :  { %v448_v41 = vsub.f32 %v445_v40, %v427_v39 }
 0x73d   :  { %v449_v42 = vadd.f32 %v448_v41, %v384_v21 }
 0x73f   :  { %v451_v44 = vsub.f32 %v449_v42, %v450_v43 }
 0x741   :  { %v452_v45 = vmul.f32 %v558_v26, %v451_v44 }
 0x743   :  { %v453_v46 = vadd.f32 %v452_v45, %v427_v39 }
 0x745   :  { %v454_v47 = vmax.f32 %v453_v46, 0.0 }
 0x747   :  { %v455_v48 = vmin.f32 %v454_v47, 1.0 }
 0x749   :  { %472 = vmatmul.f32.vlgmr.msrb.gmra.mxu1 %v455_v48  ;;  %v478_v52 = vmul.f32 %v557_v19, %v455_v48 }
 0x7c6   :  { %v473_v49 = vpop.f32.mrf.mxu1 }
 0x7c7   :  { %v476_v50 = vsub.f32 %v473_v49, %v455_v48 }
 0x7c9   :  { %v477_v51 = vadd.f32 %v476_v50, %v384_v21 }
 0x7cb   :  { %v479_v53 = vsub.f32 %v477_v51, %v478_v52 }
 0x7cd   :  { %v480_v54 = vmul.f32 %v558_v26, %v479_v53 }
 0x7cf   :  { %v481_v55 = vadd.f32 %v480_v54, %v455_v48 }
 0x7d1   :  { %v482_v56 = vmax.f32 %v481_v55, 0.0 }
 0x7d3   :  { %v483_v57 = vmin.f32 %v482_v56, 1.0 }
 0x7d5   :  { %500 = vmatmul.f32.vlgmr.msrb.gmra.mxu2 %v483_v57  ;;  %v506_v61 = vmul.f32 %v557_v19, %v483_v57 }
 0x858   :  { %v501_v58 = vpop.f32.mrf.mxu2 }
 0x859   :  { %v504_v59 = vsub.f32 %v501_v58, %v483_v57 }
 0x85b   :  { %v505_v60 = vadd.f32 %v504_v59, %v384_v21 }
 0x85d   :  { %v507_v62 = vsub.f32 %v505_v60, %v506_v61 }
 0x85f   :  { %v508_v63 = vmul.f32 %v558_v26, %v507_v62 }
 0x861   :  { %v509_v0 = vadd.f32 %v508_v63, %v483_v57 }
 0x863   :  { %v510_v1 = vmax.f32 %v509_v0, 0.0 }
 0x865   :  { %v511_v2 = vmin.f32 %v510_v1, 1.0 }
 0x867   :  { %512 = vst [vmem:[#allocation9] sm:$0xff] %v511_v2 }
 0x868   :  { %534 = dma.vmem_to_hbm [thread:$0]  %s530_s21, 128, %s532_s24, [#allocation10]  }
 0x869   :  { %683 = dma.done.wait [#allocation4], 128  }
 0x86a   :  { %684 = vsyncadd [#allocation4], 4294967168 }
 0x86b   :  { %685 = dma.done.wait [#allocation10], 128  }
 0x86c   :  { %686 = vsyncadd [#allocation10], 4294967168 }
 0x86d   :  { %543 = vsyncpa [#allocation3], 1 }
 0x86e   :  { %544 = vsyncpa [#allocation6], 1 }
 0x86f   :  { %545 = vsyncpa [#allocation4], 1 }
 0x870   :  { %546 = vsyncpa [#allocation10], 1 }

</bundles_post_ra>
